<compile_context>
chip_gen: v7x
topology: tpu7x:2x2x1
jax: 0.10.0
libtpu: 0.0.40
codegen_flags: <defaults>
</compile_context>

<pallas_src>
import jax
import jax.numpy as jnp
from jax.experimental import pallas as pl
from jax.experimental.pallas import tpu as pltpu

IN_F, HID_F, OUT_F = 1, 3, 4
LANE = 128  # TPU lane width
SUB = 8     # sublane multiple

# Flat parameter layout in SMEM:
#   params[0:3]   = w1[k, 0]            (Linear(1,3) weights)
#   params[3:6]   = b1[k]
#   params[6:18]  = w2[j, k] row-major  (Linear(3,4) weights)
#   params[18:22] = b2[j]
_W1_OFF = 0
_B1_OFF = HID_F
_W2_OFF = 2 * HID_F
_B2_OFF = _W2_OFF + OUT_F * HID_F
_N_PARAMS = _B2_OFF + OUT_F  # 22


def _sigmoid(v):
    # exp lowers to the EUP; plain divide on the VPU. Kernel is HBM-bound anyway.
    return 1.0 / (1.0 + jnp.exp(-v))


def _mlp_kernel(params_ref, x_ref, o_ref):
    # x: (TILE_R, 128), one batch element per lane.
    x = x_ref[...]

    # Layer 1: Linear(1, 3) + Sigmoid -> 3 scalar FMAs (scalars read from SMEM).
    h = [
        _sigmoid(params_ref[_W1_OFF + k] * x + params_ref[_B1_OFF + k])
        for k in range(HID_F)
    ]

    # Layer 2: Linear(3, 4) + Sigmoid -> 12 scalar FMAs, one lane-dense output
    # plane per output feature.
    for j in range(OUT_F):
        y = params_ref[_B2_OFF + j] + params_ref[_W2_OFF + j * HID_F + 0] * h[0]
        for k in range(1, HID_F):
            y = y + params_ref[_W2_OFF + j * HID_F + k] * h[k]
        o_ref[j] = _sigmoid(y)


def generator_forward(x, w1, b1, w2, b2, *, tile_rows=512):
    """Forward pass of the Generator.

    x:  (B, 1) float32 (PyTorch layout)
    w1: (3, 1), b1: (3,), w2: (4, 3), b2: (4,)   (PyTorch nn.Linear shapes)
    returns (B, 4) float32
    """
    B = x.shape[0]

    # Batch packed one element per lane -> rows of 128 elements.
    rows = pl.cdiv(max(B, 1), LANE)
    if rows >= tile_rows:
        tile_r = tile_rows                       # large batch: big pipelined tiles
    else:
        tile_r = ((rows + SUB - 1) // SUB) * SUB  # small batch: single small tile
    n_tiles = pl.cdiv(rows, tile_r)
    R = n_tiles * tile_r
    Bp = R * LANE

    # 22 scalars -> one flat SMEM-resident vector.
    params = jnp.concatenate(
        [w1.reshape(-1), b1.reshape(-1), w2.reshape(-1), b2.reshape(-1)]
    ).astype(jnp.float32)

    # Lane-dense input: (R, 128), padded batch slots are zero (harmless; sliced off).
    x_flat = x.reshape(-1).astype(jnp.float32)
    x_pad = jnp.zeros((Bp,), jnp.float32).at[:B].set(x_flat)
    x_tiles = x_pad.reshape(R, LANE)

    out = pl.pallas_call(
        _mlp_kernel,
        out_shape=jax.ShapeDtypeStruct((OUT_F, R, LANE), jnp.float32),
        grid=(n_tiles,),
        in_specs=[
            pl.BlockSpec(memory_space=pltpu.MemorySpace.SMEM),   # 22 scalars
            pl.BlockSpec((tile_r, LANE), lambda i: (i, 0)),      # batch tile
        ],
        out_specs=pl.BlockSpec((OUT_F, tile_r, LANE), lambda i: (0, i, 0)),
        compiler_params=pltpu.CompilerParams(
            dimension_semantics=("parallel",),
        ),
    )(params, x_tiles)

    # (OUT_F, R, 128) -> (Bp, OUT_F) -> (B, OUT_F)
    y = out.transpose(1, 2, 0).reshape(Bp, OUT_F)
    return y[:B]


def _reference_forward(x, w1, b1, w2, b2):
    h = jax.nn.sigmoid(x @ w1.T + b1)
    return jax.nn.sigmoid(h @ w2.T + b2)


if __name__ == "__main__":
    key = jax.random.PRNGKey(0)
    k_x, k_w1, k_b1, k_w2, k_b2 = jax.random.split(key, 5)

    # PyTorch-style uniform init bounds: 1/sqrt(fan_in).
    bound1 = 1.0
    bound2 = 1.0 / (3.0 ** 0.5)
    w1 = jax.random.uniform(k_w1, (HID_F, IN_F), jnp.float32, -bound1, bound1)
    b1 = jax.random.uniform(k_b1, (HID_F,), jnp.float32, -bound1, bound1)
    w2 = jax.random.uniform(k_w2, (OUT_F, HID_F), jnp.float32, -bound2, bound2)
    b2 = jax.random.uniform(k_b2, (OUT_F,), jnp.float32, -bound2, bound2)

    # Small batch of scalar inputs (Linear(1, 3) first layer).
    B = 8
    x = jax.random.uniform(k_x, (B, IN_F), jnp.float32)

    y = generator_forward(x, w1, b1, w2, b2)
    y = jax.block_until_ready(y)
    y_ref = _reference_forward(x, w1, b1, w2, b2)
    assert y.shape == (B, OUT_F), y.shape
    assert jnp.allclose(y, y_ref, atol=1e-5, rtol=1e-5), "mismatch vs reference"

    # Also exercise the multi-tile grid path with a larger (still small) batch.
    B2 = 2000
    x2 = jax.random.uniform(k_x, (B2, IN_F), jnp.float32)
    y2 = jax.block_until_ready(generator_forward(x2, w1, b1, w2, b2, tile_rows=8))
    y2_ref = _reference_forward(x2, w1, b1, w2, b2)
    assert y2.shape == (B2, OUT_F), y2.shape
    assert jnp.allclose(y2, y2_ref, atol=1e-5, rtol=1e-5), "mismatch vs reference (grid path)"

    print("KERNEL_OK")
</pallas_src>

<mosaic_0001>
module attributes {stable_mosaic.version = 11 : i64} {
  func.func @_mlp_kernel(%arg0: i32, %arg1: memref<22xf32, #tpu.memory_space<smem>>, %arg2: memref<8x128xf32, #tpu.memory_space<vmem>>, %arg3: memref<4x8x128xf32, #tpu.memory_space<vmem>>) attributes {dimension_semantics = [#tpu.dimension_semantics<parallel>], iteration_bounds = array<i64: 1>, scalar_prefetch = 0 : i64, scratch_operands = 0 : i64, tpu.core_type = #tpu.core_type<tc>, window_params = [{transform_indices = @transform_0, window_bounds = array<i64: 22>}, {transform_indices = @transform_1, window_bounds = array<i64: 8, 128>}, {transform_indices = @transform_2, window_bounds = array<i64: 4, 8, 128>}]} {
    %c0 = arith.constant 0 : index
    %c0_0 = arith.constant 0 : index
    %0 = vector.load %arg2[%c0, %c0_0] : memref<8x128xf32, #tpu.memory_space<vmem>>, vector<8x128xf32>
    %c0_1 = arith.constant 0 : index
    %1 = memref.load %arg1[%c0_1] : memref<22xf32, #tpu.memory_space<smem>>
    %2 = vector.broadcast %1 : f32 to vector<8x128xf32>
    %3 = arith.mulf %2, %0 : vector<8x128xf32>
    %c3 = arith.constant 3 : index
    %4 = memref.load %arg1[%c3] : memref<22xf32, #tpu.memory_space<smem>>
    %5 = vector.broadcast %4 : f32 to vector<8x128xf32>
    %6 = arith.addf %3, %5 : vector<8x128xf32>
    %cst = arith.constant 0.000000e+00 : f32
    %7 = vector.broadcast %cst : f32 to vector<8x128xf32>
    %8 = arith.subf %7, %6 : vector<8x128xf32>
    %9 = math.exp %8 : vector<8x128xf32>
    %cst_2 = arith.constant 1.000000e+00 : f32
    %10 = vector.broadcast %cst_2 : f32 to vector<8x128xf32>
    %11 = arith.addf %10, %9 : vector<8x128xf32>
    %cst_3 = arith.constant 1.000000e+00 : f32
    %12 = vector.broadcast %cst_3 : f32 to vector<8x128xf32>
    %13 = arith.divf %12, %11 : vector<8x128xf32>
    %c1 = arith.constant 1 : index
    %14 = memref.load %arg1[%c1] : memref<22xf32, #tpu.memory_space<smem>>
    %15 = vector.broadcast %14 : f32 to vector<8x128xf32>
    %16 = arith.mulf %15, %0 : vector<8x128xf32>
    %c4 = arith.constant 4 : index
    %17 = memref.load %arg1[%c4] : memref<22xf32, #tpu.memory_space<smem>>
    %18 = vector.broadcast %17 : f32 to vector<8x128xf32>
    %19 = arith.addf %16, %18 : vector<8x128xf32>
    %cst_4 = arith.constant 0.000000e+00 : f32
    %20 = vector.broadcast %cst_4 : f32 to vector<8x128xf32>
    %21 = arith.subf %20, %19 : vector<8x128xf32>
    %22 = math.exp %21 : vector<8x128xf32>
    %cst_5 = arith.constant 1.000000e+00 : f32
    %23 = vector.broadcast %cst_5 : f32 to vector<8x128xf32>
    %24 = arith.addf %23, %22 : vector<8x128xf32>
    %cst_6 = arith.constant 1.000000e+00 : f32
    %25 = vector.broadcast %cst_6 : f32 to vector<8x128xf32>
    %26 = arith.divf %25, %24 : vector<8x128xf32>
    %c2 = arith.constant 2 : index
    %27 = memref.load %arg1[%c2] : memref<22xf32, #tpu.memory_space<smem>>
    %28 = vector.broadcast %27 : f32 to vector<8x128xf32>
    %29 = arith.mulf %28, %0 : vector<8x128xf32>
    %c5 = arith.constant 5 : index
    %30 = memref.load %arg1[%c5] : memref<22xf32, #tpu.memory_space<smem>>
    %31 = vector.broadcast %30 : f32 to vector<8x128xf32>
    %32 = arith.addf %29, %31 : vector<8x128xf32>
    %cst_7 = arith.constant 0.000000e+00 : f32
    %33 = vector.broadcast %cst_7 : f32 to vector<8x128xf32>
    %34 = arith.subf %33, %32 : vector<8x128xf32>
    %35 = math.exp %34 : vector<8x128xf32>
    %cst_8 = arith.constant 1.000000e+00 : f32
    %36 = vector.broadcast %cst_8 : f32 to vector<8x128xf32>
    %37 = arith.addf %36, %35 : vector<8x128xf32>
    %cst_9 = arith.constant 1.000000e+00 : f32
    %38 = vector.broadcast %cst_9 : f32 to vector<8x128xf32>
    %39 = arith.divf %38, %37 : vector<8x128xf32>
    %c18 = arith.constant 18 : index
    %40 = memref.load %arg1[%c18] : memref<22xf32, #tpu.memory_space<smem>>
    %c6 = arith.constant 6 : index
    %41 = memref.load %arg1[%c6] : memref<22xf32, #tpu.memory_space<smem>>
    %42 = vector.broadcast %41 : f32 to vector<8x128xf32>
    %43 = arith.mulf %42, %13 : vector<8x128xf32>
    %44 = vector.broadcast %40 : f32 to vector<8x128xf32>
    %45 = arith.addf %44, %43 : vector<8x128xf32>
    %c7 = arith.constant 7 : index
    %46 = memref.load %arg1[%c7] : memref<22xf32, #tpu.memory_space<smem>>
    %47 = vector.broadcast %46 : f32 to vector<8x128xf32>
    %48 = arith.mulf %47, %26 : vector<8x128xf32>
    %49 = arith.addf %45, %48 : vector<8x128xf32>
    %c8 = arith.constant 8 : index
    %50 = memref.load %arg1[%c8] : memref<22xf32, #tpu.memory_space<smem>>
    %51 = vector.broadcast %50 : f32 to vector<8x128xf32>
    %52 = arith.mulf %51, %39 : vector<8x128xf32>
    %53 = arith.addf %49, %52 : vector<8x128xf32>
    %cst_10 = arith.constant 0.000000e+00 : f32
    %54 = vector.broadcast %cst_10 : f32 to vector<8x128xf32>
    %55 = arith.subf %54, %53 : vector<8x128xf32>
    %56 = math.exp %55 : vector<8x128xf32>
    %cst_11 = arith.constant 1.000000e+00 : f32
    %57 = vector.broadcast %cst_11 : f32 to vector<8x128xf32>
    %58 = arith.addf %57, %56 : vector<8x128xf32>
    %cst_12 = arith.constant 1.000000e+00 : f32
    %59 = vector.broadcast %cst_12 : f32 to vector<8x128xf32>
    %60 = arith.divf %59, %58 : vector<8x128xf32>
    %c0_13 = arith.constant 0 : index
    %c0_14 = arith.constant 0 : index
    %c0_15 = arith.constant 0 : index
    %61 = vector.load %arg3[%c0_13, %c0_14, %c0_15] : memref<4x8x128xf32, #tpu.memory_space<vmem>>, vector<1x8x128xf32>
    %62 = vector.shape_cast %61 : vector<1x8x128xf32> to vector<8x128xf32>
    %63 = vector.shape_cast %60 : vector<8x128xf32> to vector<1x8x128xf32>
    tpu.vector_store %arg3[%c0_13, %c0_14, %c0_15], %63 {strides = array<i32>} : memref<4x8x128xf32, #tpu.memory_space<vmem>>, vector<1x8x128xf32>,
    %c19 = arith.constant 19 : index
    %64 = memref.load %arg1[%c19] : memref<22xf32, #tpu.memory_space<smem>>
    %c9 = arith.constant 9 : index
    %65 = memref.load %arg1[%c9] : memref<22xf32, #tpu.memory_space<smem>>
    %66 = vector.broadcast %65 : f32 to vector<8x128xf32>
    %67 = arith.mulf %66, %13 : vector<8x128xf32>
    %68 = vector.broadcast %64 : f32 to vector<8x128xf32>
    %69 = arith.addf %68, %67 : vector<8x128xf32>
    %c10 = arith.constant 10 : index
    %70 = memref.load %arg1[%c10] : memref<22xf32, #tpu.memory_space<smem>>
    %71 = vector.broadcast %70 : f32 to vector<8x128xf32>
    %72 = arith.mulf %71, %26 : vector<8x128xf32>
    %73 = arith.addf %69, %72 : vector<8x128xf32>
    %c11 = arith.constant 11 : index
    %74 = memref.load %arg1[%c11] : memref<22xf32, #tpu.memory_space<smem>>
    %75 = vector.broadcast %74 : f32 to vector<8x128xf32>
    %76 = arith.mulf %75, %39 : vector<8x128xf32>
    %77 = arith.addf %73, %76 : vector<8x128xf32>
    %cst_16 = arith.constant 0.000000e+00 : f32
    %78 = vector.broadcast %cst_16 : f32 to vector<8x128xf32>
    %79 = arith.subf %78, %77 : vector<8x128xf32>
    %80 = math.exp %79 : vector<8x128xf32>
    %cst_17 = arith.constant 1.000000e+00 : f32
    %81 = vector.broadcast %cst_17 : f32 to vector<8x128xf32>
    %82 = arith.addf %81, %80 : vector<8x128xf32>
    %cst_18 = arith.constant 1.000000e+00 : f32
    %83 = vector.broadcast %cst_18 : f32 to vector<8x128xf32>
    %84 = arith.divf %83, %82 : vector<8x128xf32>
    %c1_19 = arith.constant 1 : index
    %c0_20 = arith.constant 0 : index
    %c0_21 = arith.constant 0 : index
    %85 = vector.load %arg3[%c1_19, %c0_20, %c0_21] : memref<4x8x128xf32, #tpu.memory_space<vmem>>, vector<1x8x128xf32>
    %86 = vector.shape_cast %85 : vector<1x8x128xf32> to vector<8x128xf32>
    %87 = vector.shape_cast %84 : vector<8x128xf32> to vector<1x8x128xf32>
    tpu.vector_store %arg3[%c1_19, %c0_20, %c0_21], %87 {strides = array<i32>} : memref<4x8x128xf32, #tpu.memory_space<vmem>>, vector<1x8x128xf32>,
    %c20 = arith.constant 20 : index
    %88 = memref.load %arg1[%c20] : memref<22xf32, #tpu.memory_space<smem>>
    %c12 = arith.constant 12 : index
    %89 = memref.load %arg1[%c12] : memref<22xf32, #tpu.memory_space<smem>>
    %90 = vector.broadcast %89 : f32 to vector<8x128xf32>
    %91 = arith.mulf %90, %13 : vector<8x128xf32>
    %92 = vector.broadcast %88 : f32 to vector<8x128xf32>
    %93 = arith.addf %92, %91 : vector<8x128xf32>
    %c13 = arith.constant 13 : index
    %94 = memref.load %arg1[%c13] : memref<22xf32, #tpu.memory_space<smem>>
    %95 = vector.broadcast %94 : f32 to vector<8x128xf32>
    %96 = arith.mulf %95, %26 : vector<8x128xf32>
    %97 = arith.addf %93, %96 : vector<8x128xf32>
    %c14 = arith.constant 14 : index
    %98 = memref.load %arg1[%c14] : memref<22xf32, #tpu.memory_space<smem>>
    %99 = vector.broadcast %98 : f32 to vector<8x128xf32>
    %100 = arith.mulf %99, %39 : vector<8x128xf32>
    %101 = arith.addf %97, %100 : vector<8x128xf32>
    %cst_22 = arith.constant 0.000000e+00 : f32
    %102 = vector.broadcast %cst_22 : f32 to vector<8x128xf32>
    %103 = arith.subf %102, %101 : vector<8x128xf32>
    %104 = math.exp %103 : vector<8x128xf32>
    %cst_23 = arith.constant 1.000000e+00 : f32
    %105 = vector.broadcast %cst_23 : f32 to vector<8x128xf32>
    %106 = arith.addf %105, %104 : vector<8x128xf32>
    %cst_24 = arith.constant 1.000000e+00 : f32
    %107 = vector.broadcast %cst_24 : f32 to vector<8x128xf32>
    %108 = arith.divf %107, %106 : vector<8x128xf32>
    %c2_25 = arith.constant 2 : index
    %c0_26 = arith.constant 0 : index
    %c0_27 = arith.constant 0 : index
    %109 = vector.load %arg3[%c2_25, %c0_26, %c0_27] : memref<4x8x128xf32, #tpu.memory_space<vmem>>, vector<1x8x128xf32>
    %110 = vector.shape_cast %109 : vector<1x8x128xf32> to vector<8x128xf32>
    %111 = vector.shape_cast %108 : vector<8x128xf32> to vector<1x8x128xf32>
    tpu.vector_store %arg3[%c2_25, %c0_26, %c0_27], %111 {strides = array<i32>} : memref<4x8x128xf32, #tpu.memory_space<vmem>>, vector<1x8x128xf32>,
    %c21 = arith.constant 21 : index
    %112 = memref.load %arg1[%c21] : memref<22xf32, #tpu.memory_space<smem>>
    %c15 = arith.constant 15 : index
    %113 = memref.load %arg1[%c15] : memref<22xf32, #tpu.memory_space<smem>>
    %114 = vector.broadcast %113 : f32 to vector<8x128xf32>
    %115 = arith.mulf %114, %13 : vector<8x128xf32>
    %116 = vector.broadcast %112 : f32 to vector<8x128xf32>
    %117 = arith.addf %116, %115 : vector<8x128xf32>
    %c16 = arith.constant 16 : index
    %118 = memref.load %arg1[%c16] : memref<22xf32, #tpu.memory_space<smem>>
    %119 = vector.broadcast %118 : f32 to vector<8x128xf32>
    %120 = arith.mulf %119, %26 : vector<8x128xf32>
    %121 = arith.addf %117, %120 : vector<8x128xf32>
    %c17 = arith.constant 17 : index
    %122 = memref.load %arg1[%c17] : memref<22xf32, #tpu.memory_space<smem>>
    %123 = vector.broadcast %122 : f32 to vector<8x128xf32>
    %124 = arith.mulf %123, %39 : vector<8x128xf32>
    %125 = arith.addf %121, %124 : vector<8x128xf32>
    %cst_28 = arith.constant 0.000000e+00 : f32
    %126 = vector.broadcast %cst_28 : f32 to vector<8x128xf32>
    %127 = arith.subf %126, %125 : vector<8x128xf32>
    %128 = math.exp %127 : vector<8x128xf32>
    %cst_29 = arith.constant 1.000000e+00 : f32
    %129 = vector.broadcast %cst_29 : f32 to vector<8x128xf32>
    %130 = arith.addf %129, %128 : vector<8x128xf32>
    %cst_30 = arith.constant 1.000000e+00 : f32
    %131 = vector.broadcast %cst_30 : f32 to vector<8x128xf32>
    %132 = arith.divf %131, %130 : vector<8x128xf32>
    %c3_31 = arith.constant 3 : index
    %c0_32 = arith.constant 0 : index
    %c0_33 = arith.constant 0 : index
    %133 = vector.load %arg3[%c3_31, %c0_32, %c0_33] : memref<4x8x128xf32, #tpu.memory_space<vmem>>, vector<1x8x128xf32>
    %134 = vector.shape_cast %133 : vector<1x8x128xf32> to vector<8x128xf32>
    %135 = vector.shape_cast %132 : vector<8x128xf32> to vector<1x8x128xf32>
    tpu.vector_store %arg3[%c3_31, %c0_32, %c0_33], %135 {strides = array<i32>} : memref<4x8x128xf32, #tpu.memory_space<vmem>>, vector<1x8x128xf32>,
    return
  }
  func.func @transform_0(%arg0: i32) -> i32 {
    %c0_i32 = arith.constant 0 : i32
    %c0_i32_0 = arith.constant 0 : i32
    return %c0_i32 : i32
  }
  func.func @transform_1(%arg0: i32) -> (i32, i32) {
    %c0_i32 = arith.constant 0 : i32
    %c0_i32_0 = arith.constant 0 : i32
    return %arg0, %c0_i32 : i32, i32
  }
  func.func @transform_2(%arg0: i32) -> (i32, i32, i32) {
    %c0_i32 = arith.constant 0 : i32
    %c0_i32_0 = arith.constant 0 : i32
    %c0_i32_1 = arith.constant 0 : i32
    return %c0_i32, %arg0, %c0_i32_0 : i32, i32, i32
  }
}

</mosaic_0001>

<bundles_post_ra>
// kernel: tpu_custom_call.1
= control target key start
LH: loop header
LB: loop body
LE: loop exit
PB: predicated region body
PF: predicated region fallthrough
CT: control target
= control target key end

     0   :  { %7 = vsyncpa [#allocation5], 0  ;;  %s389_s0 = inlined_call_operand.hbm [shape: f32[22], index: 0, kind: input, shape index: {}]   ;;  %s390_s1 = inlined_call_operand.hbm [shape: f32[8,128], index: 1, kind: input, shape index: {}]   ;;  %s391_s2 = inlined_call_operand.hbm [shape: f32[4,8,128], index: 2, kind: output, shape index: {}]  }
   0x1   :  { %8 = vsyncpa [#allocation3], 0 }
   0x2   :  { %9 = vsyncpa [#allocation4], 0  ;;  %s231_s11 = scalar_lea.hbm %s389_s0, 16 }
   0x3   :  { %p232_p0 = scmp.ne.s32.totalorder %s389_s0, %s231_s11  ;;  %p235_p1 = scmp.lt.u32.totalorder %s231_s11, %s389_s0 }
   0x5   :  { %p237_p2 = pnand %p235_p1, %p232_p0 }
   0x7   :  { %240 = shalt.err (!%p237_p2)
}
   0x8   :  { %s291_s16 = smov [#allocation2]   ;;  %s292_s19 = smov [#allocation6]  }
   0x9   :  { %17 = dma.hbm_to_smem %s389_s0, 16, %s291_s16, [#allocation5]  }
   0xa   :  { %s24_s20 = sshll.u32 %s292_s19, 4  ;;  %s241_s23 = scalar_lea.hbm %s390_s1, 128  ;;  %s25_s20 = int_to_ptr.vmem [resolvable:$true] %s24_s20 }
   0xb   :  { %p242_p3 = scmp.ne.s32.totalorder %s390_s1, %s241_s23  ;;  %p245_p4 = scmp.lt.u32.totalorder %s241_s23, %s390_s1 }
   0xd   :  { %p247_p5 = pnand %p245_p4, %p242_p3 }
   0xf   :  { %250 = shalt.err (!%p247_p5)
}
  0x10   :  { %s251_s28 = scalar_lea.vmem %s25_s20, 128  ;;  %p256_p7 = scmp.lt.s32.totalorder %s25_s20, %s25_s20 }
  0x11   :  { %p252_p6 = scmp.ne.s32.totalorder %s25_s20, %s251_s28  ;;  %p257_p8 = scmp.lt.s32.totalorder %s251_s28, %s251_s28 }
  0x13   :  { %p258_p9 = por %p257_p8, %p256_p7 }
  0x15   :  { %p259_p10 = pnand %p258_p9, %p252_p6 }
  0x17   :  { %262 = shalt.err (!%p259_p10)
}
  0x18   :  { %27 = dma.hbm_to_vmem [thread:$0]  %s390_s1, 128, %s25_s20, [#allocation3]  }
  0x19   :  { %285 = dma.done.wait [#allocation5], 16  }
  0x1a   :  { %286 = vsyncadd [#allocation5], 4294967280 }
  0x1b   :  { %287 = dma.done.wait [#allocation3], 128  }
  0x1c   :  { %288 = vsyncadd [#allocation3], 4294967168 }
  0x1d   :  { %34 = sfence }
  0x1e   :  { %s36_s30 = sld [smem:[#allocation2]]  ;;  %s177_s3 = sld [smem:[#allocation2 + $0x3]]  ;;  %v35_v0 = vld [vmem:[#allocation6] sm:$0xff] }
  0x1f   :  { %s178_s4 = sld [smem:[#allocation2 + $0x1]]  ;;  %s179_s5 = sld [smem:[#allocation2 + $0x4]] }
  0x20   :  { %s180_s6 = sld [smem:[#allocation2 + $0x2]]  ;;  %s181_s7 = sld [smem:[#allocation2 + $0x5]] }
  0x21   :  { %s335_s1 = sld [smem:[#allocation2 + $0x12]]  ;;  %s337_s8 = sld [smem:[#allocation2 + $0x6]] }
  0x22   :  { %s339_s9 = sld [smem:[#allocation2 + $0x7]]  ;;  %s341_s10 = sld [smem:[#allocation2 + $0x8]] }
  0x23   :  { %s343_s11 = sld [smem:[#allocation2 + $0x13]]  ;;  %s345_s12 = sld [smem:[#allocation2 + $0x9]] }
  0x24   :  { %v37_v1 = vstv %s36_s30  ;;  %v40_v2 = vstv %s177_s3  ;;  %s347_s13 = sld [smem:[#allocation2 + $0xa]]  ;;  %s349_s14 = sld [smem:[#allocation2 + $0xb]] }
  0x25   :  { %v38_v3 = vmul.f32 %v37_v1, %v35_v0  ;;  %v49_v4 = vstv %s178_s4  ;;  %v52_v5 = vstv %s179_s5  ;;  %s351_s15 = sld [smem:[#allocation2 + $0x14]]  ;;  %s355_s17 = sld [smem:[#allocation2 + $0xd]] }
  0x26   :  { %v50_v6 = vmul.f32 %v49_v4, %v35_v0  ;;  %v61_v7 = vstv %s180_s6  ;;  %v64_v8 = vstv %s181_s7  ;;  %s353_s16 = sld [smem:[#allocation2 + $0xc]]  ;;  %s195_s18 = sld [smem:[#allocation2 + $0xf]] }
  0x27   :  { %v41_v9 = vadd.f32 %v40_v2, %v38_v3  ;;  %v62_v10 = vmul.f32 %v61_v7, %v35_v0  ;;  %s357_s19 = sld [smem:[#allocation2 + $0xe]]  ;;  %s196_s20 = sld [smem:[#allocation2 + $0x10]]  ;;  %v74_v25 = vstv %s337_s8  ;;  %v76_v26 = vstv %s335_s1 }
  0x28   :  { %v53_v11 = vadd.f32 %v52_v5, %v50_v6  ;;  %s359_s21 = sld [smem:[#allocation2 + $0x15]]  ;;  %s361_s22 = sld [smem:[#allocation2 + $0x11]]  ;;  %v79_v27 = vstv %s339_s9  ;;  %v83_v28 = vstv %s341_s10 }
  0x29   :  { %v42_v12 = vsub.f32 0.0, %v41_v9  ;;  %v65_v13 = vadd.f32 %v64_v8, %v62_v10  ;;  %v95_v29 = vstv %s345_s12  ;;  %v97_v30 = vstv %s343_s11  ;;  %s293_s23 = smov [#allocation7]  }
  0x2a   :  { %v54_v14 = vsub.f32 0.0, %v53_v11  ;;  %v100_v33 = vstv %s347_s13  ;;  %v104_v34 = vstv %s349_s14  ;;  %s164_s24 = sshll.u32 %s293_s23, 4  ;;  %s165_s24 = int_to_ptr.vmem [resolvable:$true] %s164_s24 }
  0x2b   :  { %v43_v15 = vmul.f32 1.442695, %v42_v12  ;;  %v66_v16 = vsub.f32 0.0, %v65_v13  ;;  %v122_v35 = vstv %s355_s17  ;;  %v119_v38 = vstv %s351_s15  ;;  %s263_s25 = scalar_lea.vmem %s165_s24, 512  ;;  %p268_p12 = scmp.lt.s32.totalorder %s165_s24, %s165_s24 }
  0x2c   :  { %v55_v17 = vmul.f32 1.442695, %v54_v14  ;;  %v117_v31 = vstv %s353_s16  ;;  %v139_v32 = vstv %s195_s18  ;;  %p264_p11 = scmp.ne.s32.totalorder %s165_s24, %s263_s25  ;;  %p269_p13 = scmp.lt.s32.totalorder %s263_s25, %s263_s25 }
  0x2d   :  { %203 = vpow2.f32 %v43_v15  ;;  %v67_v18 = vmul.f32 1.442695, %v66_v16  ;;  %v144_v36 = vstv %s196_s20  ;;  %v126_v39 = vstv %s357_s19 }
  0x2e   :  { %205 = vpow2.f32 %v55_v17  ;;  %v141_v40 = vstv %s359_s21  ;;  %v148_v41 = vstv %s361_s22  ;;  %p270_p0 = por %p269_p13, %p268_p12 }
  0x2f   :  { %207 = vpow2.f32 %v67_v18 }
  0x30   :  { %p271_p1 = pnand %p270_p0, %p264_p11 }
  0x37   :  { %v204_v19 = vpop.eup %203 }
  0x38   :  { %v206_v20 = vpop.eup %205  ;;  %v45_v21 = vadd.f32 1.0, %v204_v19 }
  0x39   :  { %v208_v22 = vpop.eup %207  ;;  %v57_v23 = vadd.f32 1.0, %v206_v20 }
  0x3a   :  { %209 = vrcp.f32 %v45_v21  ;;  %v69_v24 = vadd.f32 1.0, %v208_v22 }
  0x3b   :  { %211 = vrcp.f32 %v57_v23 }
  0x3c   :  { %213 = vrcp.f32 %v69_v24 }
  0x44   :  { %v210_v37 = vpop.eup %209 }
  0x45   :  { %v212_v42 = vpop.eup %211  ;;  %v75_v43 = vmul.f32 %v210_v37, %v74_v25  ;;  %v96_v44 = vmul.f32 %v210_v37, %v95_v29  ;;  %v118_v45 = vmul.f32 %v210_v37, %v117_v31  ;;  %v140_v46 = vmul.f32 %v210_v37, %v139_v32 }
  0x46   :  { %v214_v47 = vpop.eup %213  ;;  %v80_v48 = vmul.f32 %v212_v42, %v79_v27  ;;  %v101_v49 = vmul.f32 %v212_v42, %v100_v33  ;;  %v123_v50 = vmul.f32 %v212_v42, %v122_v35  ;;  %v145_v51 = vmul.f32 %v212_v42, %v144_v36 }
  0x47   :  { %v77_v52 = vadd.f32 %v76_v26, %v75_v43  ;;  %v84_v53 = vmul.f32 %v214_v47, %v83_v28  ;;  %v98_v54 = vadd.f32 %v97_v30, %v96_v44  ;;  %v105_v55 = vmul.f32 %v214_v47, %v104_v34 }
  0x48   :  { %v120_v56 = vadd.f32 %v119_v38, %v118_v45  ;;  %v127_v57 = vmul.f32 %v214_v47, %v126_v39  ;;  %v142_v58 = vadd.f32 %v141_v40, %v140_v46  ;;  %v149_v59 = vmul.f32 %v214_v47, %v148_v41 }
  0x49   :  { %v81_v60 = vadd.f32 %v80_v48, %v77_v52  ;;  %v102_v61 = vadd.f32 %v101_v49, %v98_v54 }
  0x4a   :  { %v124_v62 = vadd.f32 %v123_v50, %v120_v56  ;;  %v146_v63 = vadd.f32 %v145_v51, %v142_v58 }
  0x4b   :  { %v85_v0 = vadd.f32 %v84_v53, %v81_v60  ;;  %v106_v1 = vadd.f32 %v105_v55, %v102_v61 }
  0x4c   :  { %v128_v2 = vadd.f32 %v127_v57, %v124_v62  ;;  %v150_v3 = vadd.f32 %v149_v59, %v146_v63 }
  0x4d   :  { %v86_v4 = vsub.f32 0.0, %v85_v0  ;;  %v107_v5 = vsub.f32 0.0, %v106_v1 }
  0x4e   :  { %v129_v6 = vsub.f32 0.0, %v128_v2  ;;  %v151_v7 = vsub.f32 0.0, %v150_v3 }
  0x4f   :  { %v87_v8 = vmul.f32 1.442695, %v86_v4  ;;  %v108_v9 = vmul.f32 1.442695, %v107_v5 }
  0x50   :  { %v130_v10 = vmul.f32 1.442695, %v129_v6  ;;  %v152_v11 = vmul.f32 1.442695, %v151_v7 }
  0x51   :  { %215 = vpow2.f32 %v87_v8 }
  0x52   :  { %217 = vpow2.f32 %v108_v9 }
  0x53   :  { %219 = vpow2.f32 %v130_v10 }
  0x54   :  { %221 = vpow2.f32 %v152_v11 }
  0x5b   :  { %v216_v12 = vpop.eup %215 }
  0x5c   :  { %v218_v13 = vpop.eup %217  ;;  %v89_v14 = vadd.f32 1.0, %v216_v12 }
  0x5d   :  { %v220_v15 = vpop.eup %219  ;;  %v110_v16 = vadd.f32 1.0, %v218_v13 }
  0x5e   :  { %v222_v17 = vpop.eup %221  ;;  %223 = vrcp.f32 %v89_v14  ;;  %v132_v18 = vadd.f32 1.0, %v220_v15 }
  0x5f   :  { %225 = vrcp.f32 %v110_v16  ;;  %v154_v19 = vadd.f32 1.0, %v222_v17 }
  0x60   :  { %227 = vrcp.f32 %v132_v18 }
  0x61   :  { %229 = vrcp.f32 %v154_v19 }
  0x68   :  { %v224_v20 = vpop.eup %223 }
  0x69   :  { %v226_v21 = vpop.eup %225  ;;  %92 = vst [vmem:[#allocation7] sm:$0xff] %v224_v20 }
  0x6a   :  { %v228_v22 = vpop.eup %227  ;;  %114 = vst [vmem:[#allocation7 + $0x8] sm:$0xff] %v226_v21 }
  0x6b   :  { %v230_v23 = vpop.eup %229  ;;  %136 = vst [vmem:[#allocation7 + $0x10] sm:$0xff] %v228_v22 }
  0x6c   :  { %158 = vst [vmem:[#allocation7 + $0x18] sm:$0xff] %v230_v23 }
  0x6d   :  { %274 = shalt.err (!%p271_p1)
}
  0x6e   :  { %s275_s28 = scalar_lea.hbm %s391_s2, 512 }
  0x6f   :  { %p276_p2 = scmp.ne.s32.totalorder %s391_s2, %s275_s28  ;;  %p279_p3 = scmp.lt.u32.totalorder %s275_s28, %s391_s2 }
  0x71   :  { %p281_p4 = pnand %p279_p3, %p276_p2 }
  0x73   :  { %284 = shalt.err (!%p281_p4)
}
  0x74   :  { %s294_s4 = smov 128   ;;  %s295_s5 = smov 8  }
  0x75   :  { %170 = dma.vmem_to_hbm [thread:$0]  %s165_s24, 512, %s391_s2, [#allocation4], %s294_s4, %s294_s4, %s295_s5  }
  0x76   :  { %289 = dma.done.wait [#allocation4], 512  }
  0x77   :  { %290 = vsyncadd [#allocation4], 4294966784 }
  0x78   :  { %174 = vsyncpa [#allocation3], 1 }
  0x79   :  { %175 = vsyncpa [#allocation4], 1 }
  0x7a   :  { %176 = vsyncpa [#allocation5], 1 }

</bundles_post_ra>
